<compile_context>
chip_gen: v7x
topology: tpu7x:2x2x1
jax: 0.10.0
libtpu: 0.0.40
codegen_flags: <defaults>
</compile_context>

<pallas_src>
import jax
import jax.numpy as jnp
from jax.experimental import pallas as pl
from jax.experimental.pallas import tpu as pltpu


# ----------------------------- config (small, synthetic) ---------------------
B   = 8            # batch
E   = 32           # emb-size
EH  = 32           # enc-hidden-size  (enc ctx vector is 2*EH wide)
DH  = 32           # dec-hidden-size
CIN = 2 * EH + E   # input width of the original y_concat linear
T   = 4            # timesteps for the sequence-mode demo


# ----------------------------- one-time parameter prep ------------------------
def prepare_params(params):
    """Fold y_concat into the LSTM input projection, pre-transpose, pre-scale.

    Done ONCE (outside the per-step path):
      gates = yc @ Wc^T @ Wih^T + bc @ Wih^T + b_ih + h @ Whh^T + b_hh
            = [y|enc|h] @ [W_in; Whh^T] + b_in
    and (sigmoid-via-tanh trick) the i/f/o columns of every weight/bias are
    scaled by 0.5 so the kernel only needs tanh:
      sigmoid(x) = 0.5 * tanh(x/2) + 0.5
    The g-gate columns are left unscaled (they really use tanh).
    """
    e, _ = params["wc"].shape
    dh4 = params["w_ih"].shape[0]
    dh = dh4 // 4

    wc_t  = params["wc"].T                                          # (CIN, E)
    wih_t = params["w_ih"].T                                        # (E, 4*DH)
    w_in  = wc_t @ wih_t                                            # (CIN, 4*DH)
    b_in  = params["bc"] @ wih_t + params["b_ih"] + params["b_hh"]  # (4*DH,)
    whh_t = params["w_hh"].T                                        # (DH, 4*DH)

    # Pre-scale i/f/o gate columns (NOT the g columns) by 0.5.
    col   = jnp.arange(dh4)
    scale = jnp.where((col >= 2 * dh) & (col < 3 * dh), 1.0, 0.5)   # (4*DH,)
    w_in  = w_in  * scale[None, :]
    whh_t = whh_t * scale[None, :]
    b_in  = b_in  * scale

    w_y = w_in[:e]                                                  # (E,    4*DH)
    w_e = w_in[e:]                                                  # (2*EH, 4*DH)
    w_all = jnp.concatenate([w_y, w_e, whh_t], axis=0)              # (128,  4*DH)

    return {
        "w_y":   w_y,
        "w_e":   w_e,
        "w_hh":  whh_t,
        "w_all": w_all,
        "b":     b_in[None, :],                                     # (1, 4*DH)
    }


# ----------------------------- shared gating helper ---------------------------
def _lstm_gate_update(gates_halfscaled, c, dh):
    """Single tanh pass over the full (B, 4*DH) vreg; sigmoid derived affinely.

    `gates_halfscaled` has the i/f/o pre-activations already divided by 2
    (weights pre-scaled at prep time); the g pre-activation is unscaled.
    """
    lane    = jax.lax.broadcasted_iota(jnp.int32, gates_halfscaled.shape, 1)
    is_tanh = (lane >= 2 * dh) & (lane < 3 * dh)               # g-gate lanes
    t_all   = jnp.tanh(gates_halfscaled)                       # one EUP pass
    act     = jnp.where(is_tanh, t_all, 0.5 * t_all + 0.5)     # sigmoid for i/f/o

    i_g = act[:, 0 * dh:1 * dh]
    f_g = act[:, 1 * dh:2 * dh]
    g_g = act[:, 2 * dh:3 * dh]
    o_g = act[:, 3 * dh:4 * dh]

    c_new = f_g * c + i_g * g_g
    h_new = o_g * jnp.tanh(c_new)
    return h_new, c_new


# ----------------------------- single-step kernel -----------------------------
def decoder_step_kernel(xh_ref, c_ref, w_ref, b_ref, hc_ref):
    """One fused K=128 MXU pass: gates = [y|enc|h] @ [w_y; w_e; w_hh] + b."""
    dh = c_ref.shape[-1]
    gates = jnp.dot(xh_ref[...], w_ref[...],
                    preferred_element_type=jnp.float32) + b_ref[...]
    h_new, c_new = _lstm_gate_update(gates, c_ref[...], dh)
    # Packed (B, 2*DH) output: single full-ref store.
    hc_ref[...] = jnp.concatenate([h_new, c_new], axis=-1)


def decoder_forward(y, pre_hidden, pre_cell, enc_ctx_vector, prepped):
    """Single timestep (matches Decoder.forward).

    NOTE: if the caller steps the decoder repeatedly, prefer
    decoder_forward_seq — each pallas_call dispatch costs ~µs and re-DMAs the
    weights; the kernel body itself is sub-µs.
    """
    xh = jnp.concatenate([y, enc_ctx_vector, pre_hidden], axis=1)   # (B, 128)
    inputs = (xh, pre_cell, prepped["w_all"], prepped["b"])

    def full_spec(a):
        return pl.BlockSpec(a.shape, lambda: (0,) * a.ndim)

    hc = pl.pallas_call(
        decoder_step_kernel,
        out_shape=jax.ShapeDtypeStruct((B, 2 * DH), jnp.float32),
        in_specs=[full_spec(a) for a in inputs],
        out_specs=pl.BlockSpec((B, 2 * DH), lambda: (0, 0)),
    )(*inputs)
    return hc[:, :DH], hc[:, DH:]


# ----------------------------- sequence-mode kernel ---------------------------
def decoder_seq_kernel(gx_ref, h0_ref, c0_ref, whh_ref, hc_ref, h_scr, c_scr):
    """One grid step = one chunk of Tc timesteps, fully unrolled in-kernel.

    (h, c) are carried as fori_loop values (vregs) inside the chunk and live in
    VMEM scratch between chunks; the packed output is written exactly once.
    """
    dh = h0_ref.shape[-1]
    t_chunk = gx_ref.shape[0]

    @pl.when(pl.program_id(0) == 0)
    def _():
        h_scr[...] = h0_ref[...]
        c_scr[...] = c0_ref[...]

    whh = whh_ref[...]                     # resident across the whole call

    def step(t, carry):
        h, c = carry
        # Only the truly sequential term runs per step: (B,DH)@(DH,4DH) + gate.
        gates = gx_ref[t] + jnp.dot(h, whh, preferred_element_type=jnp.float32)
        return _lstm_gate_update(gates, c, dh)

    h, c = jax.lax.fori_loop(0, t_chunk, step, (h_scr[...], c_scr[...]),
                             unroll=True)

    h_scr[...] = h
    c_scr[...] = c

    @pl.when(pl.program_id(0) == pl.num_programs(0) - 1)
    def _():
        hc_ref[...] = jnp.concatenate([h, c], axis=-1)   # single writeback


def _pick_chunk(t_steps, max_chunk=8):
    for c in range(min(t_steps, max_chunk), 0, -1):
        if t_steps % c == 0:
            return c
    return 1


def decoder_forward_seq(y_seq, h0, c0, enc_ctx_vector, prepped, t_chunk=None):
    """Apply the decoder cell over T timesteps inside ONE pallas_call.

    The non-recurrent input projection for all T steps is one batched matmul
    outside the recurrence; inside the kernel only the tiny h @ Whh + gating
    runs per step, with state register-carried (no per-step VMEM round-trip).
    """
    t_steps = y_seq.shape[0]
    if t_chunk is None or t_steps % t_chunk != 0:
        t_chunk = _pick_chunk(t_steps)
    n_chunks = t_steps // t_chunk

    gx = (jnp.einsum("tbe,ef->tbf", y_seq, prepped["w_y"],
                     preferred_element_type=jnp.float32)
          + (enc_ctx_vector @ prepped["w_e"] + prepped["b"])[None])  # (T,B,4*DH)

    hc = pl.pallas_call(
        decoder_seq_kernel,
        out_shape=jax.ShapeDtypeStruct((B, 2 * DH), jnp.float32),
        grid=(n_chunks,),
        in_specs=[
            pl.BlockSpec((t_chunk, B, 4 * DH), lambda i: (i, 0, 0)),  # gx chunk
            pl.BlockSpec((B, DH),              lambda i: (0, 0)),     # h0
            pl.BlockSpec((B, DH),              lambda i: (0, 0)),     # c0
            pl.BlockSpec((DH, 4 * DH),         lambda i: (0, 0)),     # Whh
        ],
        out_specs=pl.BlockSpec((B, 2 * DH), lambda i: (0, 0)),
        scratch_shapes=[pltpu.VMEM((B, DH), jnp.float32),             # h state
                        pltpu.VMEM((B, DH), jnp.float32)],            # c state
        compiler_params=pltpu.CompilerParams(
            dimension_semantics=("arbitrary",)),                      # time is serial
    )(gx, h0, c0, prepped["w_hh"])
    return hc[:, :DH], hc[:, DH:]


# ----------------------------- reference (plain JAX) --------------------------
def decoder_reference(y, pre_hidden, pre_cell, enc_ctx_vector, params):
    yc = jnp.concatenate([y, enc_ctx_vector], axis=1)
    x = yc @ params["wc"].T + params["bc"]
    gates = (x @ params["w_ih"].T + params["b_ih"]
             + pre_hidden @ params["w_hh"].T + params["b_hh"])
    i_g, f_g, g_g, o_g = jnp.split(gates, 4, axis=1)
    i_g, f_g, o_g = jax.nn.sigmoid(i_g), jax.nn.sigmoid(f_g), jax.nn.sigmoid(o_g)
    g_g = jnp.tanh(g_g)
    c_new = f_g * pre_cell + i_g * g_g
    h_new = o_g * jnp.tanh(c_new)
    return h_new, c_new


# ----------------------------- main -------------------------------------------
if __name__ == "__main__":
    key = jax.random.PRNGKey(0)
    keys = jax.random.split(key, 12)

    def u(k, shape, fan):
        bound = 1.0 / jnp.sqrt(jnp.float32(fan))
        return jax.random.uniform(k, shape, jnp.float32, -bound, bound)

    params = {
        "wc":   u(keys[0], (E, CIN), CIN),        # y_concat.weight  (E, 2EH+E)
        "bc":   u(keys[1], (E,), CIN),            # y_concat.bias
        "w_ih": u(keys[2], (4 * DH, E), DH),      # lstm.weight_ih   (4DH, E)
        "w_hh": u(keys[3], (4 * DH, DH), DH),     # lstm.weight_hh   (4DH, DH)
        "b_ih": u(keys[4], (4 * DH,), DH),        # lstm.bias_ih
        "b_hh": u(keys[5], (4 * DH,), DH),        # lstm.bias_hh
    }
    prepped = prepare_params(params)              # one-time: fold + scale + stack

    # Deterministic example inputs.
    y              = jax.random.normal(keys[6], (B, E), jnp.float32)
    pre_hidden     = jax.random.normal(keys[7], (B, DH), jnp.float32)
    pre_cell       = jax.random.normal(keys[8], (B, DH), jnp.float32)
    enc_ctx_vector = jax.random.normal(keys[9], (B, 2 * EH), jnp.float32)
    y_seq          = jax.random.normal(keys[10], (T, B, E), jnp.float32)

    # --- single step (matches Decoder.forward) ---
    h_new, c_new = decoder_forward(y, pre_hidden, pre_cell, enc_ctx_vector, prepped)
    jax.block_until_ready((h_new, c_new))
    h_ref, c_ref = decoder_reference(y, pre_hidden, pre_cell, enc_ctx_vector, params)
    assert jnp.allclose(h_new, h_ref, atol=1e-4, rtol=1e-4)
    assert jnp.allclose(c_new, c_ref, atol=1e-4, rtol=1e-4)

    # --- T repeated applications, fused into one pallas_call ---
    h_s, c_s = decoder_forward_seq(y_seq, pre_hidden, pre_cell, enc_ctx_vector, prepped)
    jax.block_until_ready((h_s, c_s))
    h_r, c_r = pre_hidden, pre_cell
    for t in range(T):
        h_r, c_r = decoder_reference(y_seq[t], h_r, c_r, enc_ctx_vector, params)
    assert jnp.allclose(h_s, h_r, atol=1e-4, rtol=1e-4)
    assert jnp.allclose(c_s, c_r, atol=1e-4, rtol=1e-4)

    # TODO(synk): for many independent decode streams on v7x, add a leading
    # batch-of-sequences grid axis marked "parallel" to use both TensorCores.
    print("KERNEL_OK")
</pallas_src>

<mosaic_0001>
module attributes {stable_mosaic.version = 11 : i64} {
  func.func @decoder_step_kernel(%arg0: memref<8x128xf32, #tpu.memory_space<vmem>>, %arg1: memref<8x32xf32, #tpu.memory_space<vmem>>, %arg2: memref<128x128xf32, #tpu.memory_space<vmem>>, %arg3: memref<1x128xf32, #tpu.memory_space<vmem>>, %arg4: memref<8x64xf32, #tpu.memory_space<vmem>>) attributes {dimension_semantics = [], scalar_prefetch = 0 : i64, scratch_operands = 0 : i64, tpu.core_type = #tpu.core_type<tc>} {
    %c0 = arith.constant 0 : index
    %c0_0 = arith.constant 0 : index
    %0 = vector.load %arg0[%c0, %c0_0] : memref<8x128xf32, #tpu.memory_space<vmem>>, vector<8x128xf32>
    %c0_1 = arith.constant 0 : index
    %c0_2 = arith.constant 0 : index
    %1 = vector.load %arg2[%c0_1, %c0_2] : memref<128x128xf32, #tpu.memory_space<vmem>>, vector<128x128xf32>
    %cst = arith.constant dense<0.000000e+00> : vector<8x128xf32>
    %2 = tpu.matmul %0, %1, %cst {dimension_numbers = #tpu.dot_dimension_numbers<[1], [0], [0], [1], [0, 0, 1, 1], [], []>} : vector<8x128xf32>, vector<128x128xf32>, vector<8x128xf32> -> vector<8x128xf32>
    %c0_3 = arith.constant 0 : index
    %c0_4 = arith.constant 0 : index
    %3 = vector.load %arg3[%c0_3, %c0_4] : memref<1x128xf32, #tpu.memory_space<vmem>>, vector<1x128xf32>
    %4 = vector.broadcast %3 : vector<1x128xf32> to vector<8x128xf32>
    %5 = arith.addf %2, %4 : vector<8x128xf32>
    %c0_5 = arith.constant 0 : index
    %c0_6 = arith.constant 0 : index
    %6 = vector.load %arg1[%c0_5, %c0_6] : memref<8x32xf32, #tpu.memory_space<vmem>>, vector<8x32xf32>
    %7 = tpu.iota {dimensions = array<i32: 1>} : vector<8x128xi32>
    %c64_i32 = arith.constant 64 : i32
    %8 = vector.broadcast %c64_i32 : i32 to vector<8x128xi32>
    %9 = arith.cmpi sge, %7, %8 : vector<8x128xi32>
    %c96_i32 = arith.constant 96 : i32
    %10 = vector.broadcast %c96_i32 : i32 to vector<8x128xi32>
    %11 = arith.cmpi slt, %7, %10 : vector<8x128xi32>
    %12 = arith.andi %9, %11 : vector<8x128xi1>
    %13 = math.tanh %5 : vector<8x128xf32>
    %cst_7 = arith.constant 5.000000e-01 : f32
    %14 = vector.broadcast %cst_7 : f32 to vector<8x128xf32>
    %15 = arith.mulf %14, %13 : vector<8x128xf32>
    %cst_8 = arith.constant 5.000000e-01 : f32
    %16 = vector.broadcast %cst_8 : f32 to vector<8x128xf32>
    %17 = arith.addf %15, %16 : vector<8x128xf32>
    %18 = arith.select %12, %13, %17 : vector<8x128xi1>, vector<8x128xf32>
    %19 = vector.extract_strided_slice %18 {offsets = [0, 0], sizes = [8, 32], strides = [1, 1]} : vector<8x128xf32> to vector<8x32xf32>
    %20 = vector.extract_strided_slice %18 {offsets = [0, 32], sizes = [8, 32], strides = [1, 1]} : vector<8x128xf32> to vector<8x32xf32>
    %21 = vector.extract_strided_slice %18 {offsets = [0, 64], sizes = [8, 32], strides = [1, 1]} : vector<8x128xf32> to vector<8x32xf32>
    %22 = vector.extract_strided_slice %18 {offsets = [0, 96], sizes = [8, 32], strides = [1, 1]} : vector<8x128xf32> to vector<8x32xf32>
    %23 = arith.mulf %20, %6 : vector<8x32xf32>
    %24 = arith.mulf %19, %21 : vector<8x32xf32>
    %25 = arith.addf %23, %24 : vector<8x32xf32>
    %26 = math.tanh %25 : vector<8x32xf32>
    %27 = arith.mulf %22, %26 : vector<8x32xf32>
    %28 = tpu.concatenate %27, %25 in 1 : vector<8x32xf32>, vector<8x32xf32> -> vector<8x64xf32>
    %c0_9 = arith.constant 0 : index
    %c0_10 = arith.constant 0 : index
    %29 = vector.load %arg4[%c0_9, %c0_10] : memref<8x64xf32, #tpu.memory_space<vmem>>, vector<8x64xf32>
    tpu.vector_store %arg4[%c0_9, %c0_10], %28 {strides = array<i32>} : memref<8x64xf32, #tpu.memory_space<vmem>>, vector<8x64xf32>,
    return
  }
}

</mosaic_0001>

<bundles_post_ra>
// kernel: tpu_custom_call.1
= control target key start
LH: loop header
LB: loop body
LE: loop exit
PB: predicated region body
PF: predicated region fallthrough
CT: control target
= control target key end

     0   :  { %9 = vsyncpa [#allocation3], 0  ;;  %s477_s0 = inlined_call_operand.hbm [shape: f32[8,128], index: 0, kind: input, shape index: {}]   ;;  %s478_s1 = inlined_call_operand.hbm [shape: f32[8,32], index: 1, kind: input, shape index: {}]   ;;  %s479_s2 = inlined_call_operand.hbm [shape: f32[128,128], index: 2, kind: input, shape index: {}]   ;;  %s480_s3 = inlined_call_operand.vmem [shape: f32[1,128], index: 3, kind: input, shape index: {}]   ;;  %s481_s4 = inlined_call_operand.hbm [shape: f32[8,64], index: 4, kind: output, shape index: {}]  }
   0x1   :  { %10 = vsyncpa [#allocation6], 0 }
   0x2   :  { %11 = vsyncpa [#allocation4], 0  ;;  %s390_s15 = smov [#allocation5]   ;;  %s391_s17 = smov [#allocation2]  }
   0x3   :  { %s28_s16 = sshll.u32 %s390_s15, 4  ;;  %s18_s18 = sshll.u32 %s391_s17, 4  ;;  %s29_s16 = int_to_ptr.vmem [resolvable:$true] %s28_s16  ;;  %s19_s18 = int_to_ptr.vmem [resolvable:$true] %s18_s18 }
   0x4   :  { %s296_s21 = scalar_lea.hbm %s478_s1, 128 }
   0x5   :  { %p297_p0 = scmp.ne.s32.totalorder %s478_s1, %s296_s21  ;;  %p300_p1 = scmp.lt.u32.totalorder %s296_s21, %s478_s1 }
   0x7   :  { %p302_p2 = pnand %p300_p1, %p297_p0 }
   0x9   :  { %305 = shalt.err (!%p302_p2)
}
   0xa   :  { %s306_s26 = scalar_lea.vmem %s29_s16, 128  ;;  %p311_p4 = scmp.lt.s32.totalorder %s29_s16, %s29_s16 }
   0xb   :  { %p307_p3 = scmp.ne.s32.totalorder %s29_s16, %s306_s26  ;;  %p312_p5 = scmp.lt.s32.totalorder %s306_s26, %s306_s26 }
   0xd   :  { %p313_p6 = por %p312_p5, %p311_p4 }
   0xf   :  { %p314_p7 = pnand %p313_p6, %p307_p3 }
  0x11   :  { %317 = shalt.err (!%p314_p7)
}
  0x12   :  { %31 = dma.hbm_to_vmem [thread:$0]  %s478_s1, 128, %s29_s16, [#allocation6]  }
  0x13   :  { %s318_s5 = scalar_lea.hbm %s477_s0, 128 }
  0x14   :  { %p319_p8 = scmp.ne.s32.totalorder %s477_s0, %s318_s5  ;;  %p322_p9 = scmp.lt.u32.totalorder %s318_s5, %s477_s0 }
  0x16   :  { %p324_p10 = pnand %p322_p9, %p319_p8 }
  0x18   :  { %327 = shalt.err (!%p324_p10)
}
  0x19   :  { %s328_s10 = scalar_lea.vmem %s19_s18, 128  ;;  %p333_p12 = scmp.lt.s32.totalorder %s19_s18, %s19_s18 }
  0x1a   :  { %p329_p11 = scmp.ne.s32.totalorder %s19_s18, %s328_s10  ;;  %p334_p13 = scmp.lt.s32.totalorder %s328_s10, %s328_s10 }
  0x1c   :  { %p335_p0 = por %p334_p13, %p333_p12 }
  0x1e   :  { %p336_p1 = pnand %p335_p0, %p329_p11 }
  0x20   :  { %339 = shalt.err (!%p336_p1)
}
  0x21   :  { %21 = dma.hbm_to_vmem [thread:$0]  %s477_s0, 128, %s19_s18, [#allocation3]  }
  0x22   :  { %s392_s12 = smov [#allocation7]   ;;  %s340_s16 = scalar_lea.hbm %s479_s2, 2048 }
  0x23   :  { %s37_s13 = sshll.u32 %s392_s12, 4  ;;  %p341_p2 = scmp.ne.s32.totalorder %s479_s2, %s340_s16  ;;  %s38_s13 = int_to_ptr.vmem [resolvable:$true] %s37_s13 }
  0x24   :  { %p344_p3 = scmp.lt.u32.totalorder %s340_s16, %s479_s2 }
  0x26   :  { %p346_p4 = pnand %p344_p3, %p341_p2 }
  0x28   :  { %349 = shalt.err (!%p346_p4)
}
  0x29   :  { %s350_s22 = scalar_lea.vmem %s38_s13, 2048  ;;  %p355_p6 = scmp.lt.s32.totalorder %s38_s13, %s38_s13 }
  0x2a   :  { %p351_p5 = scmp.ne.s32.totalorder %s38_s13, %s350_s22  ;;  %p356_p7 = scmp.lt.s32.totalorder %s350_s22, %s350_s22 }
  0x2c   :  { %p357_p8 = por %p356_p7, %p355_p6 }
  0x2e   :  { %p358_p9 = pnand %p357_p8, %p351_p5 }
  0x30   :  { %361 = shalt.err (!%p358_p9)
}
  0x31   :  { %s393_s0 = smov 128   ;;  %s394_s18 = smov 8  }
  0x32   :  { %43 = dma.hbm_to_vmem [thread:$0]  %s479_s2, 2048, %s38_s13, [#allocation6], %s393_s0, %s393_s0, %s394_s18  }
  0x33   :  { %384 = dma.done.wait [#allocation3], 128  }
  0x34   :  { %385 = vsyncadd [#allocation3], 4294967168 }
  0x35   :  { %386 = dma.done.wait [#allocation6], 2176  }
  0x36   :  { %387 = vsyncadd [#allocation6], 4294965120  ;;  %v395_v0 = vmov 0.0|0.0   ;;  %vm396_vm0 = vmmov 0   ;;  %v397_v1 = vmov 0.0   ;;  %v56_v2 = vld [vmem:[#allocation7] sm:$0xff]  ;;  %v150_v31 = vlaneseq }
  0x37   :  { %257 = vmatprep.subr.bf16.mxu0 %v395_v0  ;;  %254 = vmatprep.mubr.msk.f32.mxu0 %vm396_vm0, %v397_v1  ;;  %v57_v3 = vld [vmem:[#allocation7 + $0x8] sm:$0xff]  ;;  %v58_v4 = vld [vmem:[#allocation7 + $0x10] sm:$0xff]  ;;  %v59_v6 = vld [vmem:[#allocation7 + $0x18] sm:$0xff]  ;;  %s398_s26 = smov 64   ;;  %s399_s27 = smov 32   ;;  %vm184_vm4 = vcmask 261120  }
  0x38   :  { %v258_v5 = vpack.c.bf16 %v57_v3, %v56_v2  ;;  %v261_v7 = vpack.c.bf16 %v59_v6, %v58_v4  ;;  %v60_v8 = vld [vmem:[#allocation7 + $0x20] sm:$0xff]  ;;  %v61_v9 = vld [vmem:[#allocation7 + $0x28] sm:$0xff]  ;;  %v62_v11 = vld [vmem:[#allocation7 + $0x30] sm:$0xff]  ;;  %v151_v32 = vand.u32 127, %v150_v31  ;;  %vm186_vm5 = vcmask 523264  }
  0x39   :  { %v264_v10 = vpack.c.bf16 %v61_v9, %v60_v8  ;;  %v63_v12 = vld [vmem:[#allocation7 + $0x38] sm:$0xff]  ;;  %v64_v14 = vld [vmem:[#allocation7 + $0x40] sm:$0xff]  ;;  %v65_v15 = vld [vmem:[#allocation7 + $0x48] sm:$0xff] }
  0x3a   :  { %259 = vmatpush3.bf16.msra.mxu0 %v258_v5  ;;  %v267_v13 = vpack.c.bf16 %v63_v12, %v62_v11  ;;  %v270_v16 = vpack.c.bf16 %v65_v15, %v64_v14  ;;  %v66_v17 = vld [vmem:[#allocation7 + $0x50] sm:$0xff]  ;;  %v67_v18 = vld [vmem:[#allocation7 + $0x58] sm:$0xff]  ;;  %v68_v20 = vld [vmem:[#allocation7 + $0x60] sm:$0xff]  ;;  %vm152_vm1 = vcmp.ge.s32.totalorder %v151_v32, 64  ;;  %vm153_vm2 = vcmp.lt.s32.totalorder %v151_v32, 96 }
  0x3b   :  { %260 = vmatprep.subr.bf16.mxu0 %v395_v0  ;;  %v273_v19 = vpack.c.bf16 %v67_v18, %v66_v17  ;;  %v69_v21 = vld [vmem:[#allocation7 + $0x68] sm:$0xff]  ;;  %v70_v23 = vld [vmem:[#allocation7 + $0x70] sm:$0xff]  ;;  %v71_v24 = vld [vmem:[#allocation7 + $0x78] sm:$0xff] }
  0x3c   :  { %v276_v22 = vpack.c.bf16 %v69_v21, %v68_v20  ;;  %v279_v25 = vpack.c.bf16 %v71_v24, %v70_v23  ;;  %v55_v26 = vld [vmem:[#allocation2] sm:$0xff]  ;;  %vm154_vm3 = vmand %vm152_vm1, %vm153_vm2  ;;  %v149_v37 = vld [vmem:[#allocation5] sm:$0xff] }
  0x3d   :  { %v204_v27 = vld [vmem:[%s480_s3] ss:$0 sm:$0xff]  ;;  %s400_s3 = smov [#allocation8]  }
  0x3e   :  { %262 = vmatpush3.bf16.msra.mxu0 %v261_v7  ;;  %s194_s28 = sshll.u32 %s400_s3, 4  ;;  %s195_s28 = int_to_ptr.vmem [resolvable:$true] %s194_s28 }
  0x3f   :  { %263 = vmatprep.subr.bf16.mxu0 %v395_v0  ;;  %s362_s29 = scalar_lea.vmem %s195_s28, 128  ;;  %p367_p11 = scmp.lt.s32.totalorder %s195_s28, %s195_s28 }
  0x40   :  { %p363_p10 = scmp.ne.s32.totalorder %s195_s28, %s362_s29  ;;  %p368_p12 = scmp.lt.s32.totalorder %s362_s29, %s362_s29 }
  0x42   :  { %265 = vmatpush3.bf16.msra.mxu0 %v264_v10  ;;  %p369_p13 = por %p368_p12, %p367_p11 }
  0x43   :  { %266 = vmatprep.subr.bf16.mxu0 %v395_v0 }
  0x44   :  { %p370_p0 = pnand %p369_p13, %p363_p10 }
  0x46   :  { %268 = vmatpush3.bf16.msra.mxu0 %v267_v13 }
  0x47   :  { %269 = vmatprep.subr.bf16.mxu0 %v395_v0 }
  0x4a   :  { %271 = vmatpush3.bf16.msra.mxu0 %v270_v16 }
  0x4b   :  { %272 = vmatprep.subr.bf16.mxu0 %v395_v0 }
  0x4e   :  { %274 = vmatpush3.bf16.msra.mxu0 %v273_v19 }
  0x4f   :  { %275 = vmatprep.subr.bf16.mxu0 %v395_v0 }
  0x52   :  { %277 = vmatpush3.bf16.msra.mxu0 %v276_v22 }
  0x53   :  { %278 = vmatprep.subr.bf16.mxu0 %v395_v0 }
  0x56   :  { %280 = vmatpush3.bf16.msra.mxu0 %v279_v25 }
  0x59   :  { %255 = vmatmul.mubr.f32.vlgmr.msra.gmra.mrb[0].mxu0 %v55_v26 }
 0x12c   :  { %v145_v28 = vpop.f32.mrb[0].mxu0 }
 0x12d   :  { %v146_v29 = vadd.f32 %v204_v27, %v145_v28  ;;  %v256_v30 = vpop.f32.mrb[1].mxu0 }
 0x12f   :  { %292 = vtanh.f32 %v146_v29 }
 0x139   :  { %v293_v33 = vpop.eup %292 }
 0x13a   :  { %v156_v34 = vmul.f32 0.5, %v293_v33 }
 0x13c   :  { %v157_v35 = vadd.f32 0.5, %v156_v34 }
 0x13e   :  { %v158_v36 = vsel %vm154_vm3, %v293_v33, %v157_v35 }
 0x13f   :  { %165 = vrot.lane.b32.xlu0 %v158_v36, %s398_s26 }
 0x143   :  { %160 = vrot.lane.b32.xlu0 %v149_v37, %s399_s27 }
 0x1b1   :  { %v166_v38 = vpop.permute.xlu0 %165 }
 0x1b2   :  { %v168_v39 = vmul.f32 %v166_v38, %v158_v36 }
 0x1b4   :  { %170 = vrot.lane.b32.xlu1 %v168_v39, %s399_s27 }
 0x1b5   :  { %v161_v40 = vpop.permute.xlu0 %160 }
 0x1b6   :  { %v163_v41 = vmul.f32 %v161_v40, %v158_v36 }
 0x226   :  { %v171_v42 = vpop.permute.xlu1 %170 }
 0x227   :  { %v173_v43 = vadd.f32 %v171_v42, %v163_v41 }
 0x229   :  { %294 = vtanh.f32 %v173_v43 }
 0x233   :  { %v295_v44 = vpop.eup %294 }
 0x234   :  { %176 = vrot.lane.b32.xlu1 %v295_v44, %s398_s26 }
 0x2a6   :  { %v177_v45 = vpop.permute.xlu1 %176 }
 0x2a7   :  { %v179_v46 = vmul.f32 %v177_v45, %v158_v36 }
 0x2a9   :  { %181 = vrot.lane.b32.xlu0 %v179_v46, %s399_s27 }
 0x31b   :  { %v182_v47 = vpop.permute.xlu0 %181 }
 0x31c   :  { %v185_v48 = vsel %vm184_vm4, %v182_v47, %v173_v43 }
 0x31d   :  { %187 = vst.msk [vmem:[#allocation8] sm:$0xff] %vm186_vm5, %v185_v48 }
 0x31e   :  { %373 = shalt.err (!%p370_p0)
}
 0x31f   :  { %s374_s6 = scalar_lea.hbm %s481_s4, 128 }
 0x320   :  { %p375_p1 = scmp.ne.s32.totalorder %s481_s4, %s374_s6  ;;  %p378_p2 = scmp.lt.u32.totalorder %s374_s6, %s481_s4 }
 0x322   :  { %p380_p3 = pnand %p378_p2, %p375_p1 }
 0x324   :  { %383 = shalt.err (!%p380_p3)
}
 0x325   :  { %197 = dma.vmem_to_hbm [thread:$0]  %s195_s28, 128, %s481_s4, [#allocation4]  }
 0x326   :  { %388 = dma.done.wait [#allocation4], 128  }
 0x327   :  { %389 = vsyncadd [#allocation4], 4294967168 }
 0x328   :  { %201 = vsyncpa [#allocation3], 1 }
 0x329   :  { %202 = vsyncpa [#allocation6], 1 }
 0x32a   :  { %203 = vsyncpa [#allocation4], 1 }

</bundles_post_ra>
